<compile_context>
chip_gen: v7x
topology: tpu7x:2x2x1
jax: 0.10.0
libtpu: 0.0.40
codegen_flags: <defaults>
</compile_context>

<pallas_src>
import functools
import math

import jax
import jax.numpy as jnp
from jax import lax
from jax.experimental import pallas as pl
from jax.experimental.pallas import tpu as pltpu


def _round_up(x, m):
    return (x + m - 1) // m * m


def repack_weight_4bit(weight_quant):
    """One-time offline layout transform of the static 4-bit packed weight.

    Original packing: byte j holds column 2j (low nibble) / 2j+1 (high nibble).
    New packing:      byte j holds column j (low) / column j + K/2 (high).
    With this layout the kernel's dequantized low/high nibble planes are the
    contiguous column ranges [0, K/2) and [K/2, K), so the activations do not
    need an even/odd de-interleave at runtime.
    """
    w = weight_quant.astype(jnp.int32)
    low = w & 15
    high = (w >> 4) & 15
    n, kh = weight_quant.shape
    vals = jnp.zeros((n, 2 * kh), jnp.int32)
    vals = vals.at[:, 0::2].set(low).at[:, 1::2].set(high)
    return ((vals[:, kh:] << 4) | vals[:, :kh]).astype(jnp.uint8)


def _tpu_defaults():
    """(vmem_capacity_bytes, target N-tile, prefer >=2 N tiles) per generation."""
    kind = ""
    try:
        kind = jax.devices()[0].device_kind.lower()
    except Exception:
        pass
    vmem_bytes = None
    try:
        vmem_bytes = int(pltpu.get_tpu_info().vmem_capacity_bytes)
    except Exception:
        vmem_bytes = None
    if not vmem_bytes:
        # Conservative default = v7x's 64 MiB per TensorCore; v5e/v6e: 128 MiB.
        vmem_bytes = (128 << 20) if ("v5" in kind or "v6" in kind) else (64 << 20)
    if "v6" in kind:
        target_tn = 1024   # 128 MiB VMEM; highest flops/byte demand -> big tn
    elif "v5" in kind:
        target_tn = 512    # ~240 flops/byte roofline; 256-512 already balances x
    else:
        target_tn = 512    # v7x (64 MiB/TC) or unknown
    prefer_split = "v7" in kind   # 2 TensorCores per chip: keep n_tiles >= 2
    return vmem_bytes, target_tn, prefer_split


def _vmem_footprint(tm, K, Kh, r, tn):
    """Approximate per-call VMEM bytes for a given (tm, tn) tiling."""
    x_buf = 2 * tm * K * 2            # double-buffered x tile (bf16)
    xa_buf = 2 * tm * r * 2           # double-buffered hoisted xa tile (bf16)
    wq_buf = 2 * tn * Kh              # double-buffered packed weight (uint8)
    w_scr = tn * K * 2                # persistent dequant scratch (bf16)
    out_buf = 2 * tm * tn * 4         # double-buffered output tile (f32)
    params = 2 * (4 * Kh * 4 + r * tn * 2 + tn * 4)   # scale/zero/B.T/bias
    deq_tmp = tn * min(Kh, 512) * 12  # transient int32 + f32 dequant slabs
    return x_buf + xa_buf + wq_buf + w_scr + out_buf + params + deq_tmp


def _pick_tn(N, target, fits):
    """Largest tn <= target that divides N, is lane-legal (multiple of 128 or
    equal to N), and whose VMEM footprint fits the budget."""
    smallest_legal = N
    for t in range(min(target, N), 0, -1):
        if N % t:
            continue
        if t != N and t % 128:
            continue
        smallest_legal = t
        if fits(t):
            return t
    return smallest_legal


def _lora_quant_kernel(x_ref, xa_ref, wq_ref, slo_ref, shi_ref, zlo_ref,
                       zhi_ref, bt_ref, bias_ref, o_ref, w_scr, *, kh, kc):
    m_idx = pl.program_id(1)

    # Dequantize this N tile of the packed weight once (on the first M step)
    # into a bf16 VMEM scratch; it is reused for every M tile of this N tile.
    # CORRECTNESS NOTE: this cache requires M to be the innermost,
    # sequentially-iterated ("arbitrary") grid axis.  The N axis may be
    # megacore-"parallel": each core runs whole N tiles with its own scratch.
    @pl.when(m_idx == 0)
    def _dequant():
        # Chunk over <=512-column slabs to bound transient int32/f32
        # temporaries (matters inside v7x's 64 MiB VMEM).
        for c in range(0, kh, kc):
            w = wq_ref[:, c:c + kc].astype(jnp.int32)
            low = (w & 15).astype(jnp.float32)           # -> cols [c, c+kc)
            high = ((w >> 4) & 15).astype(jnp.float32)   # -> cols [kh+c, ...)
            w_scr[:, c:c + kc] = (
                (low - zlo_ref[:, c:c + kc]) * slo_ref[:, c:c + kc]
            ).astype(jnp.bfloat16)
            w_scr[:, kh + c:kh + c + kc] = (
                (high - zhi_ref[:, c:c + kc]) * shi_ref[:, c:c + kc]
            ).astype(jnp.bfloat16)

    x = x_ref[...]                                        # (tm, K) bf16

    # base = x @ W.T  (bf16 MXU, f32 accumulation, no explicit transpose)
    base = lax.dot_general(x, w_scr[...], (((1,), (1,)), ((), ())),
                           preferred_element_type=jnp.float32)      # (tm, tn)

    # lora = xa @ (scaling * B).T ; xa is hoisted to the wrapper, scaling is
    # folded into bt, so this is a cheap (tm, r) x (r, tn) matmul.
    lora = lax.dot_general(xa_ref[...], bt_ref[...], (((1,), (0,)), ((), ())),
                           preferred_element_type=jnp.float32)      # (tm, tn)

    o_ref[...] = base + bias_ref[...] + lora


def lora_linear_forward(x, weight_quant_repacked, scale, zero, lora_A, lora_B,
                        bias, *, alpha=16, r=8, tm=256, tn=None):
    """Pallas LoRALinear.forward (uint8 4-bit packed branch).

    `weight_quant_repacked` must come from `repack_weight_4bit(weight_quant)`.
    x: (..., K) f32; scale/zero: (K,) f32; lora_A: (r, K); lora_B: (N, r);
    bias: (N,) bf16.  Returns (..., N) f32.
    """
    # TODO(synk): only the uint8 4-bit packed branch of the PyTorch forward is
    # implemented (the per-row int8 scale/zero dequant branch is not).
    scaling = alpha / r
    lead = x.shape[:-1]
    K = x.shape[-1]
    M = math.prod(lead)
    N, Kh = weight_quant_repacked.shape
    assert Kh * 2 == K
    assert lora_A.shape == (r, K) and lora_B.shape == (N, r)
    assert Kh % 128 == 0, "in_features must be a multiple of 256"
    # TODO(synk): pad N / K for shapes that do not meet the tiling constraints.

    vmem_bytes, target_tn, prefer_split = _tpu_defaults()
    budget = int(0.70 * vmem_bytes)

    # ---- M tiling (pad tiny M to a multiple of 16: bf16 sublane packing) ----
    if M >= tm:
        m_pad = _round_up(M, tm)
    else:
        m_pad = _round_up(max(M, 1), 16)
        tm = m_pad
    m_tiles = m_pad // tm

    # ---- N tiling: largest legal divisor of N <= per-generation target that
    #      fits the VMEM budget (x HBM traffic scales as 1/tn). ----
    fits = lambda t: _vmem_footprint(tm, K, Kh, r, t) <= budget
    if tn is None or N % tn != 0:
        target = target_tn if tn is None else tn
        tn = _pick_tn(N, target, fits)
    if prefer_split and N // tn == 1 and N >= 256:
        # v7x: keep the "parallel" N axis >= 2 tiles so both TCs get work.
        for t2 in range(N // 2, 0, -1):
            if N % t2 == 0 and t2 % 128 == 0 and fits(t2):
                tn = t2
                break
    n_tiles = N // tn

    # Dequant slab width (static, divides Kh, <= 512).
    kc = next((c for c in (512, 256, 128) if Kh % c == 0), Kh)

    # ---- Wrapper-side glue (one fused XLA pass over x) ----
    x2 = x.reshape(M, K)
    # Hoisted LoRA first matmul (depends only on M, not N): f32 accumulation
    # matches the PyTorch x.to(float32) @ lora_A.T.
    xa = jnp.dot(x2, lora_A.T, preferred_element_type=jnp.float32)   # (M, r)
    x2 = x2.astype(jnp.bfloat16)
    xa = xa.astype(jnp.bfloat16)
    if m_pad != M:
        x2 = jnp.pad(x2, ((0, m_pad - M), (0, 0)))
        xa = jnp.pad(xa, ((0, m_pad - M), (0, 0)))

    slo = scale[:Kh].reshape(1, Kh).astype(jnp.float32)   # columns [0, K/2)
    shi = scale[Kh:].reshape(1, Kh).astype(jnp.float32)   # columns [K/2, K)
    zlo = zero[:Kh].reshape(1, Kh).astype(jnp.float32)
    zhi = zero[Kh:].reshape(1, Kh).astype(jnp.float32)
    # Fold alpha/r into lora_B.T once; kernel epilogue skips the scaling mul.
    bt_bf16 = (lora_B.astype(jnp.float32) * jnp.float32(scaling)).T.astype(
        jnp.bfloat16)                                     # (r, N) lane-dense
    bias2 = bias.reshape(1, N).astype(jnp.float32)

    # ---- VMEM limit derived from the actual footprint (generation aware) ----
    fp = _vmem_footprint(tm, K, Kh, r, tn)
    vmem_limit = min(int(0.9 * vmem_bytes), max(32 << 20, fp + (8 << 20)))

    kernel = functools.partial(_lora_quant_kernel, kh=Kh, kc=kc)

    out = pl.pallas_call(
        kernel,
        out_shape=jax.ShapeDtypeStruct((m_pad, N), jnp.float32),
        grid_spec=pltpu.PrefetchScalarGridSpec(
            num_scalar_prefetch=0,
            grid=(n_tiles, m_tiles),                          # N outer, M inner
            in_specs=[
                pl.BlockSpec((tm, K), lambda n, m: (m, 0)),   # x (bf16)
                pl.BlockSpec((tm, r), lambda n, m: (m, 0)),   # hoisted xa
                pl.BlockSpec((tn, Kh), lambda n, m: (n, 0)),  # packed weight
                pl.BlockSpec((1, Kh), lambda n, m: (0, 0)),   # scale [0, K/2)
                pl.BlockSpec((1, Kh), lambda n, m: (0, 0)),   # scale [K/2, K)
                pl.BlockSpec((1, Kh), lambda n, m: (0, 0)),   # zero  [0, K/2)
                pl.BlockSpec((1, Kh), lambda n, m: (0, 0)),   # zero  [K/2, K)
                pl.BlockSpec((r, tn), lambda n, m: (0, n)),   # (alpha/r)*B.T
                pl.BlockSpec((1, tn), lambda n, m: (0, n)),   # bias (f32)
            ],
            out_specs=pl.BlockSpec((tm, tn), lambda n, m: (m, n)),
            scratch_shapes=[pltpu.VMEM((tn, K), jnp.bfloat16)],  # cached W tile
        ),
        compiler_params=pltpu.CompilerParams(
            # N tiles are independent (megacore-parallel); the M axis must stay
            # innermost + "arbitrary" so the dequant scratch persists across it.
            dimension_semantics=("parallel", "arbitrary"),
            vmem_limit_bytes=vmem_limit,
        ),
    )(x2, xa, weight_quant_repacked, slo, shi, zlo, zhi, bt_bf16, bias2)

    if m_pad != M:
        out = out[:M]
    return out.reshape(*lead, N)


def reference_forward(x, weight_quant, scale, zero, lora_A, lora_B, bias, scaling):
    """Pure-JAX f32 mirror of the PyTorch forward (uint8 4-bit branch)."""
    w32 = weight_quant.astype(jnp.int32)
    low = (w32 & 15).astype(jnp.float32)
    high = ((w32 >> 4) & 15).astype(jnp.float32)
    n, kh = weight_quant.shape
    unpacked = jnp.zeros((n, 2 * kh), jnp.float32)
    unpacked = unpacked.at[:, 0::2].set(low).at[:, 1::2].set(high)
    W = (unpacked - zero) * scale
    base = jnp.einsum("...k,nk->...n", x, W) + bias.astype(jnp.float32)
    lora = jnp.einsum("...k,rk->...r", x, lora_A)
    lora = jnp.einsum("...r,nr->...n", lora, lora_B)
    return base + scaling * lora


if __name__ == "__main__":
    batch, seq = 2, 8
    in_features, out_features, r, alpha = 256, 128, 8, 16
    scaling = alpha / r

    key = jax.random.PRNGKey(0)
    k1, k2, k3, k4, k5, k6, k7 = jax.random.split(key, 7)

    x = jax.random.normal(k1, (batch, seq, in_features), dtype=jnp.float32)
    weight_quant = jax.random.randint(
        k2, (out_features, in_features // 2), 0, 256, dtype=jnp.int32
    ).astype(jnp.uint8)
    scale = jax.random.uniform(k3, (in_features,), dtype=jnp.float32,
                               minval=0.01, maxval=0.05)
    zero = jax.random.uniform(k4, (in_features,), dtype=jnp.float32,
                              minval=0.0, maxval=15.0)
    # kaiming_uniform_(a=sqrt(5)) -> uniform(-1/sqrt(fan_in), 1/sqrt(fan_in))
    bound_a = 1.0 / math.sqrt(in_features)
    lora_A = jax.random.uniform(k5, (r, in_features), dtype=jnp.float32,
                                minval=-bound_a, maxval=bound_a)
    # NOTE: reset_parameters() zero-inits lora_B; use small random values here
    # so the LoRA branch is numerically exercised (zeros would be trivially 0).
    lora_B = 0.02 * jax.random.normal(k6, (out_features, r), dtype=jnp.float32)
    bias = jax.random.normal(k7, (out_features,), dtype=jnp.float32).astype(jnp.bfloat16)

    # One-time offline layout transform of the static quantized weight.
    wq_repacked = repack_weight_4bit(weight_quant)

    out = lora_linear_forward(x, wq_repacked, scale, zero, lora_A, lora_B, bias,
                              alpha=alpha, r=r)
    out = jax.block_until_ready(out)

    ref = reference_forward(x, weight_quant, scale, zero, lora_A, lora_B,
                            bias, scaling)
    assert out.shape == (batch, seq, out_features) and out.dtype == jnp.float32
    # Kernel uses bf16 MXU matmuls (f32 accumulation) vs the f32 reference.
    assert jnp.allclose(out, ref, atol=5e-2, rtol=5e-2), (
        float(jnp.max(jnp.abs(out - ref))))
    print("KERNEL_OK")
</pallas_src>

<mosaic_0001>
module attributes {stable_mosaic.version = 11 : i64} {
  func.func @_lora_quant_kernel(%arg0: i32, %arg1: i32, %arg2: memref<16x256xbf16, #tpu.memory_space<vmem>>, %arg3: memref<16x8xbf16, #tpu.memory_space<vmem>>, %arg4: memref<128x128xi8, #tpu.memory_space<vmem>>, %arg5: memref<1x128xf32, #tpu.memory_space<vmem>>, %arg6: memref<1x128xf32, #tpu.memory_space<vmem>>, %arg7: memref<1x128xf32, #tpu.memory_space<vmem>>, %arg8: memref<1x128xf32, #tpu.memory_space<vmem>>, %arg9: memref<8x128xbf16, #tpu.memory_space<vmem>>, %arg10: memref<1x128xf32, #tpu.memory_space<vmem>>, %arg11: memref<16x128xf32, #tpu.memory_space<vmem>>, %arg12: memref<128x256xbf16, #tpu.memory_space<vmem>>) attributes {dimension_semantics = [#tpu.dimension_semantics<parallel>, #tpu.dimension_semantics<arbitrary>], iteration_bounds = array<i64: 1, 1>, scalar_prefetch = 0 : i64, scratch_operands = 1 : i64, tpu.core_type = #tpu.core_type<tc>, window_params = [{transform_indices = @transform_0, window_bounds = array<i64: 16, 256>}, {transform_indices = @transform_1, window_bounds = array<i64: 16, 8>}, {transform_indices = @transform_2, window_bounds = array<i64: 128, 128>}, {pipeline_mode = #tpu.pipeline_mode<synchronous>, transform_indices = @transform_3, window_bounds = array<i64: 1, 128>}, {pipeline_mode = #tpu.pipeline_mode<synchronous>, transform_indices = @transform_4, window_bounds = array<i64: 1, 128>}, {pipeline_mode = #tpu.pipeline_mode<synchronous>, transform_indices = @transform_5, window_bounds = array<i64: 1, 128>}, {pipeline_mode = #tpu.pipeline_mode<synchronous>, transform_indices = @transform_6, window_bounds = array<i64: 1, 128>}, {transform_indices = @transform_7, window_bounds = array<i64: 8, 128>}, {transform_indices = @transform_8, window_bounds = array<i64: 1, 128>}, {transform_indices = @transform_9, window_bounds = array<i64: 16, 128>}]} {
    %c0_i32 = arith.constant 0 : i32
    %0 = arith.cmpi eq, %arg1, %c0_i32 : i32
    %1 = arith.extui %0 : i1 to i32
    %c0_i32_0 = arith.constant 0 : i32
    %2 = arith.cmpi ne, %1, %c0_i32_0 : i32
    scf.if %2 {
      %c0_13 = arith.constant 0 : index
      %c0_14 = arith.constant 0 : index
      %14 = vector.load %arg4[%c0_13, %c0_14] : memref<128x128xi8, #tpu.memory_space<vmem>>, vector<128x128xi8>
      %15 = arith.extui %14 : vector<128x128xi8> to vector<128x128xi32>
      %c15_i32 = arith.constant 15 : i32
      %16 = vector.broadcast %c15_i32 : i32 to vector<128x128xi32>
      %17 = arith.andi %15, %16 : vector<128x128xi32>
      %18 = arith.sitofp %17 : vector<128x128xi32> to vector<128x128xf32>
      %c4_i32 = arith.constant 4 : i32
      %19 = vector.broadcast %c4_i32 : i32 to vector<128x128xi32>
      %20 = arith.shrsi %15, %19 : vector<128x128xi32>
      %c15_i32_15 = arith.constant 15 : i32
      %21 = vector.broadcast %c15_i32_15 : i32 to vector<128x128xi32>
      %22 = arith.andi %20, %21 : vector<128x128xi32>
      %23 = arith.sitofp %22 : vector<128x128xi32> to vector<128x128xf32>
      %c0_16 = arith.constant 0 : index
      %c0_17 = arith.constant 0 : index
      %24 = vector.load %arg7[%c0_16, %c0_17] : memref<1x128xf32, #tpu.memory_space<vmem>>, vector<1x128xf32>
      %25 = vector.broadcast %24 : vector<1x128xf32> to vector<128x128xf32>
      %26 = arith.subf %18, %25 : vector<128x128xf32>
      %c0_18 = arith.constant 0 : index
      %c0_19 = arith.constant 0 : index
      %27 = vector.load %arg5[%c0_18, %c0_19] : memref<1x128xf32, #tpu.memory_space<vmem>>, vector<1x128xf32>
      %28 = vector.broadcast %27 : vector<1x128xf32> to vector<128x128xf32>
      %29 = arith.mulf %26, %28 : vector<128x128xf32>
      %30 = arith.truncf %29 : vector<128x128xf32> to vector<128x128xbf16>
      %c0_20 = arith.constant 0 : index
      %c0_21 = arith.constant 0 : index
      %31 = vector.load %arg12[%c0_20, %c0_21] : memref<128x256xbf16, #tpu.memory_space<vmem>>, vector<128x128xbf16>
      tpu.vector_store %arg12[%c0_20, %c0_21], %30 {strides = array<i32>} : memref<128x256xbf16, #tpu.memory_space<vmem>>, vector<128x128xbf16>,
      %c0_22 = arith.constant 0 : index
      %c0_23 = arith.constant 0 : index
      %32 = vector.load %arg8[%c0_22, %c0_23] : memref<1x128xf32, #tpu.memory_space<vmem>>, vector<1x128xf32>
      %33 = vector.broadcast %32 : vector<1x128xf32> to vector<128x128xf32>
      %34 = arith.subf %23, %33 : vector<128x128xf32>
      %c0_24 = arith.constant 0 : index
      %c0_25 = arith.constant 0 : index
      %35 = vector.load %arg6[%c0_24, %c0_25] : memref<1x128xf32, #tpu.memory_space<vmem>>, vector<1x128xf32>
      %36 = vector.broadcast %35 : vector<1x128xf32> to vector<128x128xf32>
      %37 = arith.mulf %34, %36 : vector<128x128xf32>
      %38 = arith.truncf %37 : vector<128x128xf32> to vector<128x128xbf16>
      %c0_26 = arith.constant 0 : index
      %c128 = arith.constant 128 : index
      %39 = vector.load %arg12[%c0_26, %c128] : memref<128x256xbf16, #tpu.memory_space<vmem>>, vector<128x128xbf16>
      tpu.vector_store %arg12[%c0_26, %c128], %38 {strides = array<i32>} : memref<128x256xbf16, #tpu.memory_space<vmem>>, vector<128x128xbf16>,
    } else {
    }
    %c0 = arith.constant 0 : index
    %c0_1 = arith.constant 0 : index
    %3 = vector.load %arg2[%c0, %c0_1] : memref<16x256xbf16, #tpu.memory_space<vmem>>, vector<16x256xbf16>
    %c0_2 = arith.constant 0 : index
    %c0_3 = arith.constant 0 : index
    %4 = vector.load %arg12[%c0_2, %c0_3] : memref<128x256xbf16, #tpu.memory_space<vmem>>, vector<128x256xbf16>
    %cst = arith.constant dense<0.000000e+00> : vector<16x128xf32>
    %5 = tpu.matmul %3, %4, %cst {dimension_numbers = #tpu.dot_dimension_numbers<[1], [1], [0], [0], [0, 0, 1, 0], [], []>} : vector<16x256xbf16>, vector<128x256xbf16>, vector<16x128xf32> -> vector<16x128xf32>
    %c0_4 = arith.constant 0 : index
    %c0_5 = arith.constant 0 : index
    %6 = vector.load %arg3[%c0_4, %c0_5] : memref<16x8xbf16, #tpu.memory_space<vmem>>, vector<16x8xbf16>
    %c0_6 = arith.constant 0 : index
    %c0_7 = arith.constant 0 : index
    %7 = vector.load %arg9[%c0_6, %c0_7] : memref<8x128xbf16, #tpu.memory_space<vmem>>, vector<8x128xbf16>
    %cst_8 = arith.constant dense<0.000000e+00> : vector<16x128xf32>
    %8 = tpu.matmul %6, %7, %cst_8 {dimension_numbers = #tpu.dot_dimension_numbers<[1], [0], [0], [1], [0, 0, 1, 1], [], []>} : vector<16x8xbf16>, vector<8x128xbf16>, vector<16x128xf32> -> vector<16x128xf32>
    %c0_9 = arith.constant 0 : index
    %c0_10 = arith.constant 0 : index
    %9 = vector.load %arg10[%c0_9, %c0_10] : memref<1x128xf32, #tpu.memory_space<vmem>>, vector<1x128xf32>
    %10 = vector.broadcast %9 : vector<1x128xf32> to vector<16x128xf32>
    %11 = arith.addf %5, %10 : vector<16x128xf32>
    %12 = arith.addf %11, %8 : vector<16x128xf32>
    %c0_11 = arith.constant 0 : index
    %c0_12 = arith.constant 0 : index
    %13 = vector.load %arg11[%c0_11, %c0_12] : memref<16x128xf32, #tpu.memory_space<vmem>>, vector<16x128xf32>
    tpu.vector_store %arg11[%c0_11, %c0_12], %12 {strides = array<i32>} : memref<16x128xf32, #tpu.memory_space<vmem>>, vector<16x128xf32>,
    return
  }
  func.func @transform_0(%arg0: i32, %arg1: i32) -> (i32, i32) {
    %c0_i32 = arith.constant 0 : i32
    %c0_i32_0 = arith.constant 0 : i32
    return %arg1, %c0_i32 : i32, i32
  }
  func.func @transform_1(%arg0: i32, %arg1: i32) -> (i32, i32) {
    %c0_i32 = arith.constant 0 : i32
    %c0_i32_0 = arith.constant 0 : i32
    return %arg1, %c0_i32 : i32, i32
  }
  func.func @transform_2(%arg0: i32, %arg1: i32) -> (i32, i32) {
    %c0_i32 = arith.constant 0 : i32
    %c0_i32_0 = arith.constant 0 : i32
    return %arg0, %c0_i32 : i32, i32
  }
  func.func @transform_3(%arg0: i32, %arg1: i32) -> (i32, i32) {
    %c0_i32 = arith.constant 0 : i32
    %c0_i32_0 = arith.constant 0 : i32
    %c0_i32_1 = arith.constant 0 : i32
    return %c0_i32, %c0_i32_0 : i32, i32
  }
  func.func @transform_4(%arg0: i32, %arg1: i32) -> (i32, i32) {
    %c0_i32 = arith.constant 0 : i32
    %c0_i32_0 = arith.constant 0 : i32
    %c0_i32_1 = arith.constant 0 : i32
    return %c0_i32, %c0_i32_0 : i32, i32
  }
  func.func @transform_5(%arg0: i32, %arg1: i32) -> (i32, i32) {
    %c0_i32 = arith.constant 0 : i32
    %c0_i32_0 = arith.constant 0 : i32
    %c0_i32_1 = arith.constant 0 : i32
    return %c0_i32, %c0_i32_0 : i32, i32
  }
  func.func @transform_6(%arg0: i32, %arg1: i32) -> (i32, i32) {
    %c0_i32 = arith.constant 0 : i32
    %c0_i32_0 = arith.constant 0 : i32
    %c0_i32_1 = arith.constant 0 : i32
    return %c0_i32, %c0_i32_0 : i32, i32
  }
  func.func @transform_7(%arg0: i32, %arg1: i32) -> (i32, i32) {
    %c0_i32 = arith.constant 0 : i32
    %c0_i32_0 = arith.constant 0 : i32
    return %c0_i32, %arg0 : i32, i32
  }
  func.func @transform_8(%arg0: i32, %arg1: i32) -> (i32, i32) {
    %c0_i32 = arith.constant 0 : i32
    %c0_i32_0 = arith.constant 0 : i32
    return %c0_i32, %arg0 : i32, i32
  }
  func.func @transform_9(%arg0: i32, %arg1: i32) -> (i32, i32) {
    %c0_i32 = arith.constant 0 : i32
    return %arg1, %arg0 : i32, i32
  }
}

</mosaic_0001>

<bundles_post_ra>
// kernel: tpu_custom_call.1
= control target key start
LH: loop header
LB: loop body
LE: loop exit
PB: predicated region body
PF: predicated region fallthrough
CT: control target
= control target key end

     0   :  { %14 = vsyncpa [#allocation4], 0  ;;  %s770_s0 = inlined_call_operand.hbm [shape: bf16[16,256], index: 0, kind: input, shape index: {}]   ;;  %s771_s1 = inlined_call_operand.vmem [shape: bf16[16,8], index: 1, kind: input, shape index: {}]   ;;  %s772_s2 = inlined_call_operand.hbm [shape: u8[128,128], index: 2, kind: input, shape index: {}]   ;;  %s773_s3 = inlined_call_operand.vmem [shape: f32[1,128], index: 3, kind: input, shape index: {}]   ;;  %s774_s4 = inlined_call_operand.vmem [shape: f32[1,128], index: 4, kind: input, shape index: {}]   ;;  %s775_s5 = inlined_call_operand.vmem [shape: f32[1,128], index: 5, kind: input, shape index: {}]   ;;  %s776_s6 = inlined_call_operand.vmem [shape: f32[1,128], index: 6, kind: input, shape index: {}]   ;;  %s777_s7 = inlined_call_operand.vmem [shape: bf16[8,128], index: 7, kind: input, shape index: {}]   ;;  %s778_s8 = inlined_call_operand.vmem [shape: f32[1,128], index: 8, kind: input, shape index: {}]   ;;  %s779_s9 = inlined_call_operand.hbm [shape: f32[16,128], index: 9, kind: output, shape index: {}]  }
   0x1   :  { %15 = vsyncpa [#allocation7], 0 }
   0x2   :  { %16 = vsyncpa [#allocation5], 0  ;;  %s565_s30 = smov [#allocation3]   ;;  %s493_s13 = scalar_lea.hbm %s770_s0, 256 }
   0x3   :  { %s22_s10 = sshll.u32 %s565_s30, 4  ;;  %p494_p0 = scmp.ne.s32.totalorder %s770_s0, %s493_s13  ;;  %s23_s10 = int_to_ptr.vmem [resolvable:$true] %s22_s10 }
   0x4   :  { %p497_p1 = scmp.lt.u32.totalorder %s493_s13, %s770_s0 }
   0x6   :  { %p499_p2 = pnand %p497_p1, %p494_p0 }
   0x8   :  { %502 = shalt.err (!%p499_p2)
}
   0x9   :  { %s503_s18 = scalar_lea.vmem %s23_s10, 256  ;;  %p508_p4 = scmp.lt.s32.totalorder %s23_s10, %s23_s10 }
   0xa   :  { %p504_p3 = scmp.ne.s32.totalorder %s23_s10, %s503_s18  ;;  %p509_p5 = scmp.lt.s32.totalorder %s503_s18, %s503_s18 }
   0xc   :  { %p510_p6 = por %p509_p5, %p508_p4 }
   0xe   :  { %p511_p7 = pnand %p510_p6, %p504_p3 }
  0x10   :  { %514 = shalt.err (!%p511_p7)
}
  0x11   :  { %s566_s19 = smov 128   ;;  %s567_s20 = smov 8  }
  0x12   :  { %28 = dma.hbm_to_vmem [thread:$0]  %s770_s0, 256, %s23_s10, [#allocation4], %s566_s19, %s566_s19, %s567_s20  }
  0x13   :  { %s568_s23 = smov [#allocation6]   ;;  %s515_s27 = scalar_lea.hbm %s772_s2, 512 }
  0x14   :  { %s36_s24 = sshll.u32 %s568_s23, 4  ;;  %p516_p8 = scmp.ne.s32.totalorder %s772_s2, %s515_s27  ;;  %s37_s24 = int_to_ptr.vmem [resolvable:$true] %s36_s24 }
  0x15   :  { %p519_p9 = scmp.lt.u32.totalorder %s515_s27, %s772_s2 }
  0x17   :  { %p521_p10 = pnand %p519_p9, %p516_p8 }
  0x19   :  { %524 = shalt.err (!%p521_p10)
}
  0x1a   :  { %s525_s12 = scalar_lea.vmem %s37_s24, 512  ;;  %p530_p12 = scmp.lt.s32.totalorder %s37_s24, %s37_s24 }
  0x1b   :  { %p526_p11 = scmp.ne.s32.totalorder %s37_s24, %s525_s12  ;;  %p531_p13 = scmp.lt.s32.totalorder %s525_s12, %s525_s12 }
  0x1d   :  { %p532_p0 = por %p531_p13, %p530_p12 }
  0x1f   :  { %p533_p1 = pnand %p532_p0, %p526_p11 }
  0x21   :  { %536 = shalt.err (!%p533_p1)
}
  0x22   :  { %42 = dma.hbm_to_vmem [thread:$0]  %s772_s2, 512, %s37_s24, [#allocation7], %s566_s19, %s566_s19, %s567_s20  }
  0x23   :  { %559 = dma.done.wait [#allocation4], 256  }
  0x24   :  { %560 = vsyncadd [#allocation4], 4294967040 }
  0x25   :  { %561 = dma.done.wait [#allocation7], 512  }
  0x26   :  { %562 = vsyncadd [#allocation7], 4294966784  ;;  %v569_v0 = vmov 0.0   ;;  %vm570_vm0 = vmmov 0   ;;  %v66_v1 = vld [vmem:[#allocation6] sm:$0xff]  ;;  %v67_v6 = vld [vmem:[#allocation6 + $0x8] sm:$0xff] }
  0x27   :  { %472 = vmatprep.subr.bf16.mxu1 %v569_v0  ;;  %474 = vmatprep.mubr.msk.bf16.mxu1 %vm570_vm0, %v569_v0  ;;  %v70_v2 = vunpack.c.0.s8 %v66_v1  ;;  %v71_v3 = vunpack.c.1.s8 %v66_v1  ;;  %v72_v4 = vunpack.c.2.s8 %v66_v1  ;;  %v73_v5 = vunpack.c.3.s8 %v66_v1  ;;  %v655_v12 = vld [vmem:[%s775_s5] ss:$0 sm:$0xff]  ;;  %v492_v29 = vld [vmem:[#allocation3 + $0x4] ss:$8 sps:$4 sm:$0xff]   ;;  %s571_s22 = smov [#allocation8]  }
  0x28   :  { %v74_v7 = vunpack.c.0.s8 %v67_v6  ;;  %v75_v13 = vunpack.c.1.s8 %v67_v6  ;;  %v76_v15 = vunpack.c.2.s8 %v67_v6  ;;  %v77_v16 = vunpack.c.3.s8 %v67_v6  ;;  %v660_v30 = vld [vmem:[%s776_s6] ss:$0 sm:$0xff]  ;;  %430 = vmatprep.mubr.bf16.mxu0 %v492_v29  ;;  %s448_s23 = sshll.u32 %s571_s22, 4  ;;  %s449_s23 = int_to_ptr.vmem [resolvable:$true] %s448_s23 }
  0x29   :  { %v86_v8 = vand.u32 255, %v70_v2  ;;  %v87_v9 = vand.u32 255, %v71_v3  ;;  %v88_v10 = vand.u32 255, %v72_v4  ;;  %v89_v11 = vand.u32 255, %v73_v5  ;;  %v665_v31 = vld [vmem:[%s773_s3] ss:$0 sm:$0xff]  ;;  %p542_p3 = scmp.lt.s32.totalorder %s449_s23, %s449_s23 }
  0x2a   :  { %v90_v14 = vand.u32 255, %v74_v7  ;;  %v672_v40 = vld [vmem:[%s774_s4] ss:$0 sm:$0xff]  ;;  %v91_v43 = vand.u32 255, %v75_v13  ;;  %v92_v44 = vand.u32 255, %v76_v15  ;;  %v93_v52 = vand.u32 255, %v77_v16 }
  0x2b   :  { %v134_v17 = vshra.s32 %v86_v8, 4  ;;  %v135_v18 = vshra.s32 %v87_v9, 4  ;;  %v102_v19 = vand.u32 15, %v86_v8  ;;  %v103_v20 = vand.u32 15, %v87_v9  ;;  %s537_s24 = scalar_lea.vmem %s449_s23, 256 }
  0x2c   :  { %v136_v21 = vshra.s32 %v88_v10, 4  ;;  %v137_v22 = vshra.s32 %v89_v11, 4  ;;  %v104_v23 = vand.u32 15, %v88_v10  ;;  %v105_v24 = vand.u32 15, %v89_v11  ;;  %p538_p2 = scmp.ne.s32.totalorder %s449_s23, %s537_s24  ;;  %p543_p4 = scmp.lt.s32.totalorder %s537_s24, %s537_s24 }
  0x2d   :  { %v150_v25 = vand.u32 15, %v134_v17  ;;  %v151_v26 = vand.u32 15, %v135_v18  ;;  %v118_v27 = vcvt.s32.f32 %v102_v19  ;;  %v119_v28 = vcvt.s32.f32 %v103_v20  ;;  %v68_v19 = vld [vmem:[#allocation6 + $0x10] sm:$0xff] }
  0x2e   :  { %v152_v32 = vand.u32 15, %v136_v21  ;;  %v153_v33 = vand.u32 15, %v137_v22  ;;  %v120_v34 = vcvt.s32.f32 %v104_v23  ;;  %v121_v35 = vcvt.s32.f32 %v105_v24  ;;  %p544_p5 = por %p543_p4, %p542_p3 }
  0x2f   :  { %v166_v36 = vcvt.s32.f32 %v150_v25  ;;  %v167_v37 = vcvt.s32.f32 %v151_v26  ;;  %v189_v38 = vsub.f32 %v118_v27, %v655_v12  ;;  %v190_v39 = vsub.f32 %v119_v28, %v655_v12 }
  0x30   :  { %v168_v41 = vcvt.s32.f32 %v152_v32  ;;  %v169_v42 = vcvt.s32.f32 %v153_v33  ;;  %v191_v51 = vsub.f32 %v120_v34, %v655_v12  ;;  %v192_v55 = vsub.f32 %v121_v35, %v655_v12  ;;  %v696_v34 = vld [vmem:[#allocation6 + $0x18] sm:$0xff]  ;;  %p545_p6 = pnand %p544_p5, %p538_p2 }
  0x31   :  { %v251_v45 = vsub.f32 %v166_v36, %v660_v30  ;;  %v252_v46 = vsub.f32 %v167_v37, %v660_v30  ;;  %v212_v47 = vmul.f32 %v665_v31, %v189_v38  ;;  %v213_v48 = vmul.f32 %v665_v31, %v190_v39 }
  0x32   :  { %v253_v49 = vsub.f32 %v168_v41, %v660_v30  ;;  %v254_v50 = vsub.f32 %v169_v42, %v660_v30  ;;  %v138_v56 = vshra.s32 %v90_v14, 4  ;;  %v139_v60 = vshra.s32 %v91_v43, 4 }
  0x33   :  { %v274_v53 = vmul.f32 %v672_v40, %v251_v45  ;;  %v275_v54 = vmul.f32 %v672_v40, %v252_v46  ;;  %v228_v57 = vpack.c.bf16 %v213_v48, %v212_v47  ;;  %v106_v63 = vand.u32 15, %v90_v14 }
  0x34   :  { %v276_v58 = vmul.f32 %v672_v40, %v253_v49  ;;  %v277_v59 = vmul.f32 %v672_v40, %v254_v50  ;;  %v154_v62 = vand.u32 15, %v138_v56  ;;  %v107_v0 = vand.u32 15, %v91_v43 }
  0x35   :  { %v290_v61 = vpack.c.bf16 %v275_v54, %v274_v53  ;;  %v155_v2 = vand.u32 15, %v139_v60  ;;  %v140_v3 = vshra.s32 %v92_v44, 4  ;;  %v141_v4 = vshra.s32 %v93_v52, 4 }
  0x36   :  { %v291_v1 = vpack.c.bf16 %v277_v59, %v276_v58  ;;  %v214_v5 = vmul.f32 %v665_v31, %v191_v51  ;;  %v215_v6 = vmul.f32 %v665_v31, %v192_v55  ;;  %v170_v7 = vcvt.s32.f32 %v154_v62 }
  0x37   :  { %398 = vmatprep.subr.bf16.mxu0 %v290_v61  ;;  %v122_v8 = vcvt.s32.f32 %v106_v63  ;;  %v171_v9 = vcvt.s32.f32 %v155_v2  ;;  %v123_v10 = vcvt.s32.f32 %v107_v0  ;;  %v156_v11 = vand.u32 15, %v140_v3 }
  0x38   :  { %399 = vmatpush1.bf16.xpose.msra.mxu0 %v228_v57  ;;  %v157_v13 = vand.u32 15, %v141_v4  ;;  %v255_v14 = vsub.f32 %v170_v7, %v660_v30  ;;  %v108_v18 = vand.u32 15, %v92_v44  ;;  %v229_v20 = vpack.c.bf16 %v215_v6, %v214_v5 }
  0x39   :  { %400 = vmatprep.subr.bf16.mxu0 %v291_v1  ;;  %v256_v15 = vsub.f32 %v171_v9, %v660_v30  ;;  %v172_v16 = vcvt.s32.f32 %v156_v11  ;;  %v109_v22 = vand.u32 15, %v93_v52  ;;  %v193_v24 = vsub.f32 %v122_v8, %v655_v12 }
  0x3a   :  { %v173_v17 = vcvt.s32.f32 %v157_v13  ;;  %v278_v21 = vmul.f32 %v672_v40, %v255_v14  ;;  %v194_v25 = vsub.f32 %v123_v10, %v655_v12  ;;  %v78_v28 = vunpack.c.0.s8 %v68_v19 }
  0x3b   :  { %v279_v23 = vmul.f32 %v672_v40, %v256_v15  ;;  %v257_v26 = vsub.f32 %v172_v16, %v660_v30  ;;  %v79_v29 = vunpack.c.1.s8 %v68_v19  ;;  %v124_v33 = vcvt.s32.f32 %v108_v18  ;;  %v326_v16 = vld [vmem:[%s777_s7] sm:$0xf] }
  0x3c   :  { %v258_v27 = vsub.f32 %v173_v17, %v660_v30  ;;  %v94_v35 = vand.u32 255, %v78_v28  ;;  %v80_v37 = vunpack.c.2.s8 %v68_v19  ;;  %v81_v38 = vunpack.c.3.s8 %v68_v19  ;;  %v489_v28 = vld [vmem:[%s771_s1] sm:$0xff]  }
  0x3d   :  { %v292_v32 = vpack.c.bf16 %v279_v23, %v278_v21  ;;  %v95_v36 = vand.u32 255, %v79_v29  ;;  %v216_v39 = vmul.f32 %v665_v31, %v193_v24  ;;  %v217_v41 = vmul.f32 %v665_v31, %v194_v25 }
  0x3e   :  { %v280_v42 = vmul.f32 %v672_v40, %v257_v26  ;;  %v125_v43 = vcvt.s32.f32 %v109_v22  ;;  %v281_v44 = vmul.f32 %v672_v40, %v258_v27  ;;  %v142_v45 = vshra.s32 %v94_v35, 4 }
  0x3f   :  { %v143_v46 = vshra.s32 %v95_v36, 4  ;;  %v82_v47 = vunpack.c.0.s8 %v696_v34  ;;  %v195_v48 = vsub.f32 %v124_v33, %v655_v12  ;;  %v96_v49 = vand.u32 255, %v80_v37 }
  0x40   :  { %401 = vmatpush1.bf16.xpose.msra.mxu0 %v229_v20  ;;  %v97_v50 = vand.u32 255, %v81_v38  ;;  %v83_v51 = vunpack.c.1.s8 %v696_v34  ;;  %v158_v52 = vand.u32 15, %v142_v45  ;;  %v110_v54 = vand.u32 15, %v94_v35 }
  0x41   :  { %402 = vmatprep.subr.bf16.mxu0 %v292_v32  ;;  %v159_v53 = vand.u32 15, %v143_v46  ;;  %v111_v55 = vand.u32 15, %v95_v36  ;;  %v230_v56 = vpack.c.bf16 %v217_v41, %v216_v39  ;;  %v196_v57 = vsub.f32 %v125_v43, %v655_v12 }
  0x42   :  { %v144_v58 = vshra.s32 %v96_v49, 4  ;;  %v145_v59 = vshra.s32 %v97_v50, 4  ;;  %v293_v60 = vpack.c.bf16 %v281_v44, %v280_v42  ;;  %v174_v61 = vcvt.s32.f32 %v158_v52 }
  0x43   :  { %v175_v62 = vcvt.s32.f32 %v159_v53  ;;  %v706_v63 = vand.u32 255, %v82_v47  ;;  %v99_v2 = vand.u32 255, %v83_v51  ;;  %v126_v5 = vcvt.s32.f32 %v110_v54 }
  0x44   :  { %v160_v0 = vand.u32 15, %v144_v58  ;;  %v161_v1 = vand.u32 15, %v145_v59  ;;  %v259_v3 = vsub.f32 %v174_v61, %v660_v30  ;;  %v127_v6 = vcvt.s32.f32 %v111_v55 }
  0x45   :  { %v260_v4 = vsub.f32 %v175_v62, %v660_v30  ;;  %v218_v7 = vmul.f32 %v665_v31, %v195_v48  ;;  %v219_v8 = vmul.f32 %v665_v31, %v196_v57  ;;  %v146_v14 = vshra.s32 %v706_v63, 4 }
  0x46   :  { %v176_v9 = vcvt.s32.f32 %v160_v0  ;;  %v177_v10 = vcvt.s32.f32 %v161_v1  ;;  %v282_v11 = vmul.f32 %v672_v40, %v259_v3  ;;  %v112_v15 = vand.u32 15, %v96_v49 }
  0x47   :  { %v283_v13 = vmul.f32 %v672_v40, %v260_v4  ;;  %vm336_vm1 = vcmask 1043456   ;;  %v197_v17 = vsub.f32 %v126_v5, %v655_v12  ;;  %v198_v18 = vsub.f32 %v127_v6, %v655_v12 }
  0x48   :  { %403 = vmatpush1.bf16.xpose.msra.mxu0 %v230_v56  ;;  %v113_v19 = vand.u32 15, %v97_v50  ;;  %v147_v20 = vshra.s32 %v99_v2, 4  ;;  %v231_v21 = vpack.c.bf16 %v219_v8, %v218_v7  ;;  %v261_v22 = vsub.f32 %v176_v9, %v660_v30 }
  0x49   :  { %404 = vmatprep.subr.bf16.mxu0 %v293_v60  ;;  %v262_v23 = vsub.f32 %v177_v10, %v660_v30  ;;  %v294_v24 = vpack.c.bf16 %v283_v13, %v282_v11  ;;  %v162_v25 = vand.u32 15, %v146_v14  ;;  %v338_v27 = vsel %vm336_vm1, %v326_v16, 0 }
  0x4a   :  { %v163_v26 = vand.u32 15, %v147_v20  ;;  %473 = vmatpush3.bf16.msra.mxu1 %v338_v27  ;;  %v84_v29 = vunpack.c.2.s8 %v696_v34  ;;  %v85_v32 = vunpack.c.3.s8 %v696_v34  ;;  %vm332_vm2 = vcmask 64512  }
  0x4b   :  { %v220_v33 = vmul.f32 %v665_v31, %v197_v17  ;;  %v221_v35 = vmul.f32 %v665_v31, %v198_v18  ;;  %v128_v36 = vcvt.s32.f32 %v112_v15  ;;  %v129_v37 = vcvt.s32.f32 %v113_v19 }
  0x4c   :  { %v284_v38 = vmul.f32 %v672_v40, %v261_v22  ;;  %v285_v39 = vmul.f32 %v672_v40, %v262_v23  ;;  %v100_v41 = vand.u32 255, %v84_v29  ;;  %v101_v42 = vand.u32 255, %v85_v32 }
  0x4d   :  { %v178_v43 = vcvt.s32.f32 %v162_v25  ;;  %v179_v44 = vcvt.s32.f32 %v163_v26  ;;  %475 = vmatmul.mubr.msk.bf16.vlgmr.msra.gmra.mrb[0].mxu1 %vm332_vm2, %v489_v28  ;;  %v199_v46 = vsub.f32 %v128_v36, %v655_v12  ;;  %v200_v47 = vsub.f32 %v129_v37, %v655_v12  ;;  %v467_v25 = vld [vmem:[%s778_s8] ss:$0 sm:$0xff] }
  0x4e   :  { %v148_v45 = vshra.s32 %v100_v41, 4  ;;  %v149_v34 = vshra.s32 %v101_v42, 4  ;;  %v232_v48 = vpack.c.bf16 %v221_v35, %v220_v33  ;;  %v295_v49 = vpack.c.bf16 %v285_v39, %v284_v38 }
  0x4f   :  { %v114_v50 = vand.u32 15, %v706_v63  ;;  %v115_v51 = vand.u32 15, %v99_v2  ;;  %v263_v52 = vsub.f32 %v178_v43, %v660_v30  ;;  %v264_v53 = vsub.f32 %v179_v44, %v660_v30 }
  0x50   :  { %405 = vmatpush1.bf16.xpose.msra.mxu0 %v231_v21  ;;  %v164_v54 = vand.u32 15, %v148_v45  ;;  %v165_v55 = vand.u32 15, %v149_v34  ;;  %v222_v56 = vmul.f32 %v665_v31, %v199_v46  ;;  %v223_v57 = vmul.f32 %v665_v31, %v200_v47  ;;  %v490_v21 = vld [vmem:[#allocation3] ss:$8 sps:$4 sm:$0xff]  }
  0x51   :  { %406 = vmatprep.subr.bf16.mxu0 %v294_v24  ;;  %v130_v58 = vcvt.s32.f32 %v114_v50  ;;  %v131_v59 = vcvt.s32.f32 %v115_v51  ;;  %v286_v60 = vmul.f32 %v672_v40, %v263_v52  ;;  %v287_v61 = vmul.f32 %v672_v40, %v264_v53 }
  0x52   :  { %v180_v62 = vcvt.s32.f32 %v164_v54  ;;  %v181_v63 = vcvt.s32.f32 %v165_v55  ;;  %v233_v0 = vpack.c.bf16 %v223_v57, %v222_v56  ;;  %v116_v3 = vand.u32 15, %v100_v41 }
  0x53   :  { %v201_v1 = vsub.f32 %v130_v58, %v655_v12  ;;  %v202_v2 = vsub.f32 %v131_v59, %v655_v12  ;;  %v117_v4 = vand.u32 15, %v101_v42  ;;  %v296_v5 = vpack.c.bf16 %v287_v61, %v286_v60 }
  0x54   :  { %v265_v6 = vsub.f32 %v180_v62, %v660_v30  ;;  %v266_v7 = vsub.f32 %v181_v63, %v660_v30  ;;  %v132_v10 = vcvt.s32.f32 %v116_v3 }
  0x55   :  { %v224_v8 = vmul.f32 %v665_v31, %v201_v1  ;;  %v225_v9 = vmul.f32 %v665_v31, %v202_v2  ;;  %v133_v11 = vcvt.s32.f32 %v117_v4 }
  0x56   :  { %v288_v13 = vmul.f32 %v672_v40, %v265_v6  ;;  %v289_v14 = vmul.f32 %v672_v40, %v266_v7  ;;  %v203_v16 = vsub.f32 %v132_v10, %v655_v12 }
  0x57   :  { %v234_v15 = vpack.c.bf16 %v225_v9, %v224_v8  ;;  %v204_v17 = vsub.f32 %v133_v11, %v655_v12 }
  0x58   :  { %407 = vmatpush1.bf16.xpose.msra.mxu0 %v232_v48  ;;  %v297_v18 = vpack.c.bf16 %v289_v14, %v288_v13  ;;  %v226_v30 = vmul.f32 %v665_v31, %v203_v16 }
  0x59   :  { %408 = vmatprep.subr.bf16.mxu0 %v295_v49  ;;  %v227_v19 = vmul.f32 %v665_v31, %v204_v17 }
  0x5b   :  { %v235_v20 = vpack.c.bf16 %v227_v19, %v226_v30 }
  0x60   :  { %409 = vmatpush1.bf16.xpose.msra.mxu0 %v233_v0 }
  0x61   :  { %410 = vmatprep.subr.bf16.mxu0 %v296_v5 }
  0x68   :  { %411 = vmatpush1.bf16.xpose.msra.mxu0 %v234_v15 }
  0x69   :  { %412 = vmatprep.subr.bf16.mxu0 %v297_v18 }
  0x70   :  { %413 = vmatpush1.bf16.xpose.msra.mxu0 %v235_v20 }
  0x77   :  { %431 = vmatmul.mubr.bf16.vlgmr.msra.gmra.mrb[0].mxu0 %v490_v21 }
 0x120   :  { %v374_v22 = vpop.f32.mrb[0].mxu1 }
 0x121   :  { %v476_v23 = vpop.f32.mrb[1].mxu1  ;;  %v478_v12 = vadd.f32 %v467_v25, %v374_v22 }
 0x122   :  { %v377_v24 = vpop.f32.mrb[2].mxu1 }
 0x123   :  { %v477_v40 = vpop.f32.mrb[3].mxu1  ;;  %v480_v27 = vadd.f32 %v467_v25, %v377_v24 }
 0x14a   :  { %v432_v26 = vpop.f32.mrb[0].mxu0 }
 0x14b   :  { %v479_v28 = vadd.f32 %v478_v12, %v432_v26  ;;  %v434_v31 = vpop.f32.mrb[1].mxu0 }
 0x14c   :  { %v435_v29 = vpop.f32.mrb[2].mxu0 }
 0x14d   :  { %441 = vst [vmem:[#allocation8] sm:$0xff] %v479_v28  ;;  %v481_v32 = vadd.f32 %v480_v27, %v435_v29  ;;  %v437_v33 = vpop.f32.mrb[3].mxu0 }
 0x14f   :  { %442 = vst [vmem:[#allocation8 + $0x8] sm:$0xff] %v481_v32 }
 0x150   :  { %548 = shalt.err (!%p545_p6)
}
 0x151   :  { %s549_s26 = scalar_lea.hbm %s779_s9, 256 }
 0x152   :  { %p550_p7 = scmp.ne.s32.totalorder %s779_s9, %s549_s26  ;;  %p553_p8 = scmp.lt.u32.totalorder %s549_s26, %s779_s9 }
 0x154   :  { %p555_p9 = pnand %p553_p8, %p550_p7 }
 0x156   :  { %558 = shalt.err (!%p555_p9)
}
 0x157   :  { %454 = dma.vmem_to_hbm [thread:$0]  %s449_s23, 256, %s779_s9, [#allocation5], %s566_s19, %s566_s19, %s567_s20  }
 0x158   :  { %563 = dma.done.wait [#allocation5], 256  }
 0x159   :  { %564 = vsyncadd [#allocation5], 4294967040 }
 0x15a   :  { %458 = vsyncpa [#allocation4], 1 }
 0x15b   :  { %459 = vsyncpa [#allocation7], 1 }
 0x15c   :  { %460 = vsyncpa [#allocation5], 1 }

</bundles_post_ra>
